<compile_context>
chip_gen: v5e
topology: v5e:2x2
jax: 0.10.0
libtpu: 0.0.40
codegen_flags: <defaults>
</compile_context>

<pallas_src>
import math

import jax
import jax.numpy as jnp
from jax.experimental import pallas as pl
from jax.experimental.pallas import tpu as pltpu

_LANE = 128  # pad every dim up to a multiple of the TPU lane width


def _round_up(x, m):
    return (x + m - 1) // m * m


def _lp_kernel(g_ref, x_ref, w1t_ref, w2t_ref, y_ref, z_ref):
    """One LP branch per grid step.

    Block shapes (leading dim 1 = the branch selected by the grid index):
      g   : [1, Np, Np] bf16   (gm for step 0, gd for step 1)
      x   : [1, Np, Fp] bf16   (y0 for step 0, y0^T for step 1)
      w1t : [1, Fp, Hp] bf16   (W1^T)        w2t : [1, Hp, Fp] bf16 (W2^T)
      y   : [1, Np, Fp] f32    z   : [1, Np, Hp] f32
    """
    f32 = jnp.float32
    bf16 = jnp.bfloat16

    g = g_ref[0]      # [Np, Np]
    x = x_ref[0]      # [Np, Fp]

    # GraphConv 1 (reassociated): z = relu(g @ (x @ W1^T))
    h1 = jnp.dot(x, w1t_ref[0], preferred_element_type=f32)               # [Np, Hp]
    z = jnp.maximum(
        jnp.dot(g, h1.astype(bf16), preferred_element_type=f32), 0.0)      # [Np, Hp]
    z_ref[0] = z

    # GraphConv 2: y = sigmoid((g @ z) @ W2^T)
    h2 = jnp.dot(g, z.astype(bf16), preferred_element_type=f32)            # [Np, Hp]
    y_ref[0] = jax.nn.sigmoid(
        jnp.dot(h2.astype(bf16), w2t_ref[0], preferred_element_type=f32))  # [Np, Fp]


def prepare_gnnp(params, gm, gd):
    """One-time (per model) prep: pad + stack graphs and pad/transpose/bf16 weights.

    Both branches are packed into shared padded shapes so the kernel body is
    identical per grid step:  Np = Fp = max(pad(Nm), pad(Nd)).
    """
    nm = gm.shape[0]
    nd = gd.shape[0]
    h = params["l_w1"].shape[0]
    mp = _round_up(nm, _LANE)
    dp = _round_up(nd, _LANE)
    hp = _round_up(h, _LANE)
    np_ = max(mp, dp)   # shared (padded) node dim
    fp = max(mp, dp)    # shared (padded) feature dim (Nd for LP_l, Nm for LP_d)

    bf16 = jnp.bfloat16
    f32 = jnp.float32

    g_all = jnp.zeros((2, np_, np_), bf16)
    g_all = g_all.at[0, :nm, :nm].set(jnp.asarray(gm, f32).astype(bf16))
    g_all = g_all.at[1, :nd, :nd].set(jnp.asarray(gd, f32).astype(bf16))

    # nn.Linear weight is [out, in]; the kernel uses the transpose ([in, out]).
    w1t = jnp.zeros((2, fp, hp), bf16)
    w1t = w1t.at[0, :nd, :h].set(jnp.asarray(params["l_w1"], f32).T.astype(bf16))
    w1t = w1t.at[1, :nm, :h].set(jnp.asarray(params["d_w1"], f32).T.astype(bf16))

    w2t = jnp.zeros((2, hp, fp), bf16)
    w2t = w2t.at[0, :h, :nd].set(jnp.asarray(params["l_w2"], f32).T.astype(bf16))
    w2t = w2t.at[1, :h, :nm].set(jnp.asarray(params["d_w2"], f32).T.astype(bf16))

    return {
        "nm": nm, "nd": nd, "h": h,
        "np": np_, "fp": fp, "hp": hp,
        "g": g_all, "w1t": w1t, "w2t": w2t,
    }


def gnnp_forward(prep, y0):
    """GNNp.forward(y0) -> (yl, zl, yd, zd). One Pallas launch, 2 parallel grid steps."""
    nm, nd, h = prep["nm"], prep["nd"], prep["h"]
    np_, fp, hp = prep["np"], prep["fp"], prep["hp"]
    bf16 = jnp.bfloat16

    # Per-call wrapper work: pad y0 (and y0^T for the disease branch) directly
    # into a stacked bf16 buffer — no f32 DMA, no in-kernel cast, no in-kernel
    # transpose (the transpose is a tiny XLA op on the [Nm,Nd] array).
    y0b = jnp.asarray(y0, jnp.float32).astype(bf16)
    x_all = jnp.zeros((2, np_, fp), bf16)
    x_all = x_all.at[0, :nm, :nd].set(y0b)
    x_all = x_all.at[1, :nd, :nm].set(y0b.T)

    # Advisory cost model for the XLA scheduler (per step x 2 steps).
    flops = int(2 * (4 * np_ * hp * (fp + np_)))
    transcendentals = int(2 * np_ * fp)  # two sigmoid maps
    bytes_accessed = int(
        2 * 2 * (np_ * np_ + np_ * fp + fp * hp + hp * fp)   # bf16 inputs
        + 4 * 2 * (np_ * fp + np_ * hp)                      # f32 outputs
    )

    y_all, z_all = pl.pallas_call(
        _lp_kernel,
        grid=(2,),
        in_specs=[
            pl.BlockSpec((1, np_, np_), lambda i: (i, 0, 0)),   # g  (gm / gd)
            pl.BlockSpec((1, np_, fp), lambda i: (i, 0, 0)),    # x  (y0 / y0^T)
            pl.BlockSpec((1, fp, hp), lambda i: (i, 0, 0)),     # W1^T
            pl.BlockSpec((1, hp, fp), lambda i: (i, 0, 0)),     # W2^T
        ],
        out_specs=(
            pl.BlockSpec((1, np_, fp), lambda i: (i, 0, 0)),    # y  (yl / yd)
            pl.BlockSpec((1, np_, hp), lambda i: (i, 0, 0)),    # z  (zl / zd)
        ),
        out_shape=(
            jax.ShapeDtypeStruct((2, np_, fp), jnp.float32),
            jax.ShapeDtypeStruct((2, np_, hp), jnp.float32),
        ),
        compiler_params=pltpu.CompilerParams(
            # Independent branches: split across the 2 TensorCores on v7x;
            # a cheap 2-step loop (with write-back/compute overlap) elsewhere.
            dimension_semantics=("parallel",),
            vmem_limit_bytes=32 * 1024 * 1024,
        ),
        cost_estimate=pl.CostEstimate(
            flops=flops,
            transcendentals=transcendentals,
            bytes_accessed=bytes_accessed,
        ),
    )(prep["g"], x_all, prep["w1t"], prep["w2t"])

    # Crop the padding (sigmoid(0)=0.5 / relu(0)=0 in padded cells never leaks).
    yl = y_all[0, :nm, :nd]
    zl = z_all[0, :nm, :h]
    yd = y_all[1, :nd, :nm]
    zd = z_all[1, :nd, :h]
    return yl, zl, yd, zd


def gnnp_reference(params, gm, gd, y0):
    """Pure-JAX f32 reference of the PyTorch forward (eval mode)."""
    def lp(g, x, w1, w2):
        z = jax.nn.relu(g @ (x @ w1.T))
        y = jax.nn.sigmoid(g @ z @ w2.T)
        return y, z
    yl, zl = lp(gm, y0, params["l_w1"], params["l_w2"])
    yd, zd = lp(gd, y0.T, params["d_w1"], params["d_w2"])
    return yl, zl, yd, zd


def _xavier_uniform(key, shape):
    # matches torch.nn.init.xavier_uniform_ for a 2-D weight [fan_out, fan_in]
    fan_out, fan_in = shape
    limit = math.sqrt(6.0 / (fan_in + fan_out))
    return jax.random.uniform(key, shape, jnp.float32, -limit, limit)


def init_gnnp_params(key, n_mirna, n_disease, hidden):
    k1, k2, k3, k4 = jax.random.split(key, 4)
    return {
        # gnnpl = LP(hidden, n_disease): operates on gm with features of dim Nd
        "l_w1": _xavier_uniform(k1, (hidden, n_disease)),  # Linear(Nd -> H)
        "l_w2": _xavier_uniform(k2, (n_disease, hidden)),  # Linear(H -> Nd)
        # gnnpd = LP(hidden, n_mirna): operates on gd with features of dim Nm
        "d_w1": _xavier_uniform(k3, (hidden, n_mirna)),    # Linear(Nm -> H)
        "d_w2": _xavier_uniform(k4, (n_mirna, hidden)),    # Linear(H -> Nm)
    }


if __name__ == "__main__":
    key = jax.random.PRNGKey(0)
    n_mirna, n_disease, hidden = 16, 24, 32

    k_gm, k_gd, k_y0, k_params = jax.random.split(key, 4)

    # Deterministic synthetic inputs: symmetric similarity graphs + association matrix.
    gm = jax.random.uniform(k_gm, (n_mirna, n_mirna), jnp.float32)
    gm = 0.5 * (gm + gm.T)
    gd = jax.random.uniform(k_gd, (n_disease, n_disease), jnp.float32)
    gd = 0.5 * (gd + gd.T)
    y0 = jax.random.uniform(k_y0, (n_mirna, n_disease), jnp.float32)

    params = init_gnnp_params(k_params, n_mirna, n_disease, hidden)

    prep = prepare_gnnp(params, gm, gd)          # one-time padding / transposes
    yl, zl, yd, zd = gnnp_forward(prep, y0)      # single fused Pallas launch
    jax.block_until_ready((yl, zl, yd, zd))

    assert yl.shape == (n_mirna, n_disease)
    assert zl.shape == (n_mirna, hidden)
    assert yd.shape == (n_disease, n_mirna)
    assert zd.shape == (n_disease, hidden)
    assert bool(jnp.isfinite(yl).all()) and bool(jnp.isfinite(zl).all())
    assert bool(jnp.isfinite(yd).all()) and bool(jnp.isfinite(zd).all())

    # Validate against a pure-JAX f32 reference (bf16 MXU inputs -> loose tol).
    yl_r, zl_r, yd_r, zd_r = gnnp_reference(params, gm, gd, y0)
    for a, b in ((yl, yl_r), (zl, zl_r), (yd, yd_r), (zd, zd_r)):
        assert bool(jnp.allclose(a, b, rtol=8e-2, atol=8e-2)), \
            float(jnp.max(jnp.abs(a - b)))

    print("KERNEL_OK")
</pallas_src>

<mosaic_0001>
module attributes {stable_mosaic.version = 11 : i64} {
  func.func @_lp_kernel(%arg0: i32, %arg1: memref<1x128x128xbf16, #tpu.memory_space<vmem>>, %arg2: memref<1x128x128xbf16, #tpu.memory_space<vmem>>, %arg3: memref<1x128x128xbf16, #tpu.memory_space<vmem>>, %arg4: memref<1x128x128xbf16, #tpu.memory_space<vmem>>, %arg5: memref<1x128x128xf32, #tpu.memory_space<vmem>>, %arg6: memref<1x128x128xf32, #tpu.memory_space<vmem>>) attributes {dimension_semantics = [#tpu.dimension_semantics<parallel>], iteration_bounds = array<i64: 2>, scalar_prefetch = 0 : i64, scratch_operands = 0 : i64, tpu.core_type = #tpu.core_type<tc>, window_params = [{transform_indices = @transform_0, window_bounds = array<i64: 1, 128, 128>}, {transform_indices = @transform_1, window_bounds = array<i64: 1, 128, 128>}, {transform_indices = @transform_2, window_bounds = array<i64: 1, 128, 128>}, {transform_indices = @transform_3, window_bounds = array<i64: 1, 128, 128>}, {transform_indices = @transform_4, window_bounds = array<i64: 1, 128, 128>}, {transform_indices = @transform_5, window_bounds = array<i64: 1, 128, 128>}]} {
    %c0 = arith.constant 0 : index
    %c0_0 = arith.constant 0 : index
    %c0_1 = arith.constant 0 : index
    %0 = vector.load %arg1[%c0, %c0_0, %c0_1] : memref<1x128x128xbf16, #tpu.memory_space<vmem>>, vector<1x128x128xbf16>
    %1 = vector.shape_cast %0 : vector<1x128x128xbf16> to vector<128x128xbf16>
    %c0_2 = arith.constant 0 : index
    %c0_3 = arith.constant 0 : index
    %c0_4 = arith.constant 0 : index
    %2 = vector.load %arg2[%c0_2, %c0_3, %c0_4] : memref<1x128x128xbf16, #tpu.memory_space<vmem>>, vector<1x128x128xbf16>
    %3 = vector.shape_cast %2 : vector<1x128x128xbf16> to vector<128x128xbf16>
    %c0_5 = arith.constant 0 : index
    %c0_6 = arith.constant 0 : index
    %c0_7 = arith.constant 0 : index
    %4 = vector.load %arg3[%c0_5, %c0_6, %c0_7] : memref<1x128x128xbf16, #tpu.memory_space<vmem>>, vector<1x128x128xbf16>
    %5 = vector.shape_cast %4 : vector<1x128x128xbf16> to vector<128x128xbf16>
    %cst = arith.constant dense<0.000000e+00> : vector<128x128xf32>
    %6 = tpu.matmul %3, %5, %cst {dimension_numbers = #tpu.dot_dimension_numbers<[1], [0], [0], [1], [0, 0, 1, 1], [], []>} : vector<128x128xbf16>, vector<128x128xbf16>, vector<128x128xf32> -> vector<128x128xf32>
    %7 = arith.truncf %6 : vector<128x128xf32> to vector<128x128xbf16>
    %cst_8 = arith.constant dense<0.000000e+00> : vector<128x128xf32>
    %8 = tpu.matmul %1, %7, %cst_8 {dimension_numbers = #tpu.dot_dimension_numbers<[1], [0], [0], [1], [0, 0, 1, 1], [], []>} : vector<128x128xbf16>, vector<128x128xbf16>, vector<128x128xf32> -> vector<128x128xf32>
    %cst_9 = arith.constant 0.000000e+00 : f32
    %9 = vector.broadcast %cst_9 : f32 to vector<128x128xf32>
    %10 = arith.maximumf %8, %9 : vector<128x128xf32>
    %c0_10 = arith.constant 0 : index
    %c0_11 = arith.constant 0 : index
    %c0_12 = arith.constant 0 : index
    %11 = vector.load %arg6[%c0_10, %c0_11, %c0_12] : memref<1x128x128xf32, #tpu.memory_space<vmem>>, vector<1x128x128xf32>
    %12 = vector.shape_cast %11 : vector<1x128x128xf32> to vector<128x128xf32>
    %13 = vector.shape_cast %10 : vector<128x128xf32> to vector<1x128x128xf32>
    tpu.vector_store %arg6[%c0_10, %c0_11, %c0_12], %13 {strides = array<i32>} : memref<1x128x128xf32, #tpu.memory_space<vmem>>, vector<1x128x128xf32>,
    %14 = arith.truncf %10 : vector<128x128xf32> to vector<128x128xbf16>
    %cst_13 = arith.constant dense<0.000000e+00> : vector<128x128xf32>
    %15 = tpu.matmul %1, %14, %cst_13 {dimension_numbers = #tpu.dot_dimension_numbers<[1], [0], [0], [1], [0, 0, 1, 1], [], []>} : vector<128x128xbf16>, vector<128x128xbf16>, vector<128x128xf32> -> vector<128x128xf32>
    %16 = arith.truncf %15 : vector<128x128xf32> to vector<128x128xbf16>
    %c0_14 = arith.constant 0 : index
    %c0_15 = arith.constant 0 : index
    %c0_16 = arith.constant 0 : index
    %17 = vector.load %arg4[%c0_14, %c0_15, %c0_16] : memref<1x128x128xbf16, #tpu.memory_space<vmem>>, vector<1x128x128xbf16>
    %18 = vector.shape_cast %17 : vector<1x128x128xbf16> to vector<128x128xbf16>
    %cst_17 = arith.constant dense<0.000000e+00> : vector<128x128xf32>
    %19 = tpu.matmul %16, %18, %cst_17 {dimension_numbers = #tpu.dot_dimension_numbers<[1], [0], [0], [1], [0, 0, 1, 1], [], []>} : vector<128x128xbf16>, vector<128x128xbf16>, vector<128x128xf32> -> vector<128x128xf32>
    %20 = arith.negf %19 : vector<128x128xf32>
    %21 = math.exp %20 : vector<128x128xf32>
    %cst_18 = arith.constant 1.000000e+00 : f32
    %22 = vector.broadcast %cst_18 : f32 to vector<128x128xf32>
    %23 = arith.addf %22, %21 : vector<128x128xf32>
    %24 = arith.divf %22, %23 : vector<128x128xf32>
    %c0_19 = arith.constant 0 : index
    %c0_20 = arith.constant 0 : index
    %c0_21 = arith.constant 0 : index
    %25 = vector.load %arg5[%c0_19, %c0_20, %c0_21] : memref<1x128x128xf32, #tpu.memory_space<vmem>>, vector<1x128x128xf32>
    %26 = vector.shape_cast %25 : vector<1x128x128xf32> to vector<128x128xf32>
    %27 = vector.shape_cast %24 : vector<128x128xf32> to vector<1x128x128xf32>
    tpu.vector_store %arg5[%c0_19, %c0_20, %c0_21], %27 {strides = array<i32>} : memref<1x128x128xf32, #tpu.memory_space<vmem>>, vector<1x128x128xf32>,
    return
  }
  func.func @transform_0(%arg0: i32) -> (i32, i32, i32) {
    %c0_i32 = arith.constant 0 : i32
    %c0_i32_0 = arith.constant 0 : i32
    %c0_i32_1 = arith.constant 0 : i32
    return %arg0, %c0_i32, %c0_i32_0 : i32, i32, i32
  }
  func.func @transform_1(%arg0: i32) -> (i32, i32, i32) {
    %c0_i32 = arith.constant 0 : i32
    %c0_i32_0 = arith.constant 0 : i32
    %c0_i32_1 = arith.constant 0 : i32
    return %arg0, %c0_i32, %c0_i32_0 : i32, i32, i32
  }
  func.func @transform_2(%arg0: i32) -> (i32, i32, i32) {
    %c0_i32 = arith.constant 0 : i32
    %c0_i32_0 = arith.constant 0 : i32
    %c0_i32_1 = arith.constant 0 : i32
    return %arg0, %c0_i32, %c0_i32_0 : i32, i32, i32
  }
  func.func @transform_3(%arg0: i32) -> (i32, i32, i32) {
    %c0_i32 = arith.constant 0 : i32
    %c0_i32_0 = arith.constant 0 : i32
    %c0_i32_1 = arith.constant 0 : i32
    return %arg0, %c0_i32, %c0_i32_0 : i32, i32, i32
  }
  func.func @transform_4(%arg0: i32) -> (i32, i32, i32) {
    %c0_i32 = arith.constant 0 : i32
    %c0_i32_0 = arith.constant 0 : i32
    %c0_i32_1 = arith.constant 0 : i32
    return %arg0, %c0_i32, %c0_i32_0 : i32, i32, i32
  }
  func.func @transform_5(%arg0: i32) -> (i32, i32, i32) {
    %c0_i32 = arith.constant 0 : i32
    %c0_i32_0 = arith.constant 0 : i32
    %c0_i32_1 = arith.constant 0 : i32
    return %arg0, %c0_i32, %c0_i32_0 : i32, i32, i32
  }
}

</mosaic_0001>

<bundles_post_ra>
// kernel: tpu_custom_call.1
= control target key start
LH: loop header
LB: loop body
LE: loop exit
PB: predicated region body
PF: predicated region fallthrough
CT: control target
= control target key end

     0   :  { %s2394_s0 = inlined_call_operand.hbm [shape: bf16[2,128,128], index: 0, kind: input, shape index: {}]   ;;  %s2395_s1 = inlined_call_operand.hbm [shape: bf16[2,128,128], index: 1, kind: input, shape index: {}]   ;;  %s2396_s2 = inlined_call_operand.hbm [shape: bf16[2,128,128], index: 2, kind: input, shape index: {}]   ;;  %s2397_s3 = inlined_call_operand.hbm [shape: bf16[2,128,128], index: 3, kind: input, shape index: {}]   ;;  %s2398_s4 = inlined_call_operand.hbm [shape: f32[2,128,128], index: 4, kind: output, shape index: {0}]   ;;  %s2399_s5 = inlined_call_operand.hbm [shape: f32[2,128,128], index: 5, kind: output, shape index: {1}]  }
   0x1   :  { %2406 = sst [smem:[#allocation22_spill]] %s2394_s0 }
   0x2   :  { %2407 = sst [smem:[#allocation23_spill]] %s2395_s1 }
   0x3   :  { %11 = vsyncpa [#allocation3], 0 }
   0x4   :  { %13 = vsyncpa [#allocation3 + $0x1], 0 }
   0x5   :  { %14 = vsyncpa [#allocation6], 0 }
   0x6   :  { %16 = vsyncpa [#allocation6 + $0x1], 0 }
   0x7   :  { %17 = vsyncpa [#allocation9], 0 }
   0x8   :  { %19 = vsyncpa [#allocation9 + $0x1], 0 }
   0x9   :  { %20 = vsyncpa [#allocation4], 0 }
   0xa   :  { %22 = vsyncpa [#allocation4 + $0x1], 0 }
   0xb   :  { %23 = vsyncpa [#allocation12], 0 }
   0xc   :  { %25 = vsyncpa [#allocation12 + $0x1], 0  ;;  %s2025_s18 = smov 0   ;;  %s2027_s19 = smov 0  }
   0xd   :  { %s2029_s20 = smov 0   ;;  %s2031_s21 = smov 0  }
   0xe LB: > { %2408 = sst [smem:[#allocation18_spill]] %s1985_s20  ;;  %s2046_s22 = sadd.s32 4294967295, %s1989_s21   ;;  %s1989_s21 = sphi %s2031_s21, %s2425_s21   ;;  %s1985_s20 = sphi %s2029_s20, %s2427_s20   ;;  %s1981_s19 = sphi %s2027_s19, %s2429_s19   ;;  %s1977_s18 = sphi %s2025_s18, %s2428_s18  }
   0xf   : > { %2409 = sst [smem:[#allocation19_spill]] %s1989_s21  ;;  %s1417_s23 = sadd.s32 4294967294, %s1989_s21  }
  0x10   : > { %s2050_s24 = sadd.s32 1, %s1989_s21   ;;  %s38_s25 = sadd.s32 1, %s1985_s20 }
  0x11   : > { %2410 = sst [smem:[#allocation20_spill]] %s2050_s24  ;;  %s35_s26 = ssub.s32 %s1989_s21, %s2050_s24 }
  0x12   : > { %p45_p0 = scmp.ne.s32.totalorder %s1985_s20, %s1981_s19  ;;  %p36_p1 = scmp.eq.s32.totalorder %s35_s26, 0 }
  0x13   : > { %p46_p2 = scmp.eq.s32.totalorder %s1989_s21, 0  ;;  %p51_p3 = scmp.ne.s32.totalorder %s1981_s19, %s1977_s18 }
  0x14   : > { %p52_p4 = scmp.eq.s32.totalorder %s2046_s22, 0  ;;  %p153_p7 = scmp.eq.s32.totalorder %s2046_s22, 1 }
  0x15   : > { %s2062_s27 = scalar_select %p36_p1, %s1985_s20, %s38_s25  }
  0x16   : > { %p47_p5 = por %p46_p2, %p45_p0  ;;  %p2064_p6 = por %p52_p4, %p51_p3 }
  0x17   : > { %2411 = sst [smem:[#allocation21_spill]] %s2062_s27  ;;  %p159_p8 = scmp.eq.s32.totalorder %s1417_s23, 1 }
  0x18   : > { %p1419_p9 = scmp.ge.s32.totalorder %s1989_s21, 2  ;;  %p1661_p10 = scmp.lt.s32.totalorder %s1989_s21, 2 }
  0x19   : > { %p2071_p11 = por %p153_p7, %p45_p0  ;;  %p2075_p12 = por %p159_p8, %p51_p3 }
  0x1a   : > { %s2080_s6 = sand.u32 1, %s1985_s20   ;;  %s2083_s7 = sshll.u32 %s1989_s21, 6 }
  0x1b   : > { %s2086_s8 = sshll.u32 %s2080_s6, 6  ;;  %p2088_p13 = pnand %p1661_p10, %p47_p5 }
  0x1c   : > { %s227_s10 = sand.u32 1, %s1989_s21   ;;  %s2416_s1 = sld [smem:[#allocation23_spill]] }
  0x1d   : > { %s231_s14 = scalar_lea.vmem [#allocation5], %s2086_s8  ;;  %p1432_p0 = scmp.ge.s32.totalorder %s1989_s21, 1 }
  0x1e   : > { %s239_s15 = sshll.u32 %s231_s14, 4  ;;  %s2099_s17 = scalar_lea.sflag [#allocation6], %s227_s10  ;;  %s240_s15 = int_to_ptr.vmem [resolvable:$true] %s239_s15 }
  0x1f   : > { %p1767_p2 = pneg %p2088_p13 }
  0x22   : > { %s236_s13 = scalar_lea.hbm %s2416_s1, %s2083_s7  ;;  %s1770_s12 = scalar_lea.hbm %s2416_s1, 128 }
  0x23   : > { %s237_s16 = sshll.u32 %s236_s13, 4  ;;  %s238_s16 = int_to_ptr.hbm [resolvable:$true] %s237_s16 }
  0x24   : > { %s1763_s23 = sshra.s32 %s238_s16, 4  ;;  %s1764_s23 = int_to_ptr.hbm [resolvable:$true] %s1763_s23 }
  0x25   : > { %s1765_s25 = scalar_lea.hbm %s1764_s23, 64  ;;  %p1771_p5 = scmp.lt.s32.totalorder %s1764_s23, %s2416_s1 }
  0x26   : > { %p1766_p1 = scmp.ne.s32.totalorder %s1764_s23, %s1765_s25  ;;  %p1772_p7 = scmp.lt.s32.totalorder %s1770_s12, %s1765_s25 }
  0x28   : > { %p1768_p3 = pnand %p1767_p2, %p1766_p1  ;;  %p1773_p8 = por %p1772_p7, %p1771_p5 }
  0x2a   : > { %p1769_p4 = pneg %p1768_p3 }
  0x2c   : > { %p1774_p10 = pnand %p1773_p8, %p1769_p4 }
  0x2e   : > { %1777 = shalt.err (!%p1774_p10)
}
  0x2f   : > { %s2403_s10 = smov 64   ;;  %s1992_s27 = smov 4  }
  0x30   : > { %1647 = dma.hbm_to_vmem [thread:$0]  (!%p2088_p13), %s238_s16, 1024, %s240_s15, %s2099_s17, %s2403_s10, %s2403_s10, %s1992_s27  }
  0x31   : > { %p291_p1 = scmp.lt.s32.totalorder %s1989_s21, 3  ;;  %s2417_s0 = sld [smem:[#allocation22_spill]] }
  0x32   : > { %s209_s13 = scalar_lea.vmem [#allocation2], %s2086_s8  ;;  %s206_s1 = scalar_lea.sflag [#allocation3], %s2080_s6 }
  0x33   : > { %p2125_p3 = pnand %p1432_p0, %p291_p1  ;;  %s217_s14 = sshll.u32 %s209_s13, 4  ;;  %s218_s14 = int_to_ptr.vmem [resolvable:$true] %s217_s14 }
  0x37   : > { %s214_s26 = scalar_lea.hbm %s2417_s0, %s2083_s7  ;;  %s1800_s23 = scalar_lea.hbm %s2417_s0, 128 }
  0x38   : > { %s215_s12 = sshll.u32 %s214_s26, 4  ;;  %s216_s12 = int_to_ptr.hbm [resolvable:$true] %s215_s12 }
  0x39   : > { %s1793_s20 = sshra.s32 %s216_s12, 4  ;;  %s1794_s20 = int_to_ptr.hbm [resolvable:$true] %s1793_s20 }
  0x3a   : > { %s1795_s24 = scalar_lea.hbm %s1794_s20, 64  ;;  %p1801_p0 = scmp.lt.s32.totalorder %s1794_s20, %s2417_s0 }
  0x3b   : > { %p1796_p4 = scmp.ne.s32.totalorder %s1794_s20, %s1795_s24  ;;  %p1802_p8 = scmp.lt.s32.totalorder %s1800_s23, %s1795_s24 }
  0x3d   : > { %p1798_p5 = pnand %p1796_p4, %p1767_p2  ;;  %p1803_p10 = por %p1802_p8, %p1801_p0 }
  0x3f   : > { %p1799_p7 = pneg %p1798_p5 }
  0x41   : > { %p1804_p1 = pnand %p1803_p10, %p1799_p7 }
  0x43   : > { %1807 = shalt.err (!%p1804_p1)
}
  0x44   : > { %s2419_s26 = smov 64   ;;  %s258_s16 = scalar_lea.hbm %s2396_s2, %s2083_s7 }
  0x45   : > { %1644 = dma.hbm_to_vmem [thread:$0]  (!%p2088_p13), %s216_s12, 1024, %s218_s14, %s206_s1, %s2419_s26, %s2419_s26, %s1992_s27  }
  0x46   : > { %s253_s21 = scalar_lea.vmem [#allocation7], %s2086_s8  ;;  %s259_s20 = sshll.u32 %s258_s16, 4  ;;  %s260_s20 = int_to_ptr.hbm [resolvable:$true] %s259_s20 }
  0x47   : > { %s261_s10 = sshll.u32 %s253_s21, 4  ;;  %s1823_s24 = sshra.s32 %s260_s20, 4  ;;  %s262_s10 = int_to_ptr.vmem [resolvable:$true] %s261_s10  ;;  %s1824_s24 = int_to_ptr.hbm [resolvable:$true] %s1823_s24 }
  0x48   : > { %s1825_s23 = scalar_lea.hbm %s1824_s24, 64  ;;  %s1830_s1 = scalar_lea.hbm %s2396_s2, 128 }
  0x49   : > { %p1826_p4 = scmp.ne.s32.totalorder %s1824_s24, %s1825_s23  ;;  %p1831_p0 = scmp.lt.s32.totalorder %s1824_s24, %s2396_s2 }
  0x4a   : > { %p1832_p8 = scmp.lt.s32.totalorder %s1830_s1, %s1825_s23 }
  0x4b   : > { %p1828_p5 = pnand %p1826_p4, %p1767_p2 }
  0x4c   : > { %p1833_p10 = por %p1832_p8, %p1831_p0 }
  0x4d   : > { %p1829_p7 = pneg %p1828_p5 }
  0x4f   : > { %p1834_p1 = pnand %p1833_p10, %p1829_p7 }
  0x51   : > { %1837 = shalt.err (!%p1834_p1)
}
  0x52   : > { %1650 = dma.hbm_to_vmem [thread:$0]  (!%p2088_p13), %s260_s20, 1024, %s262_s10, %s2099_s17, %s2419_s26, %s2419_s26, %s1992_s27  }
  0x53   : > { %s280_s13 = scalar_lea.hbm %s2397_s3, %s2083_s7  ;;  %s275_s16 = scalar_lea.vmem [#allocation8], %s2086_s8 }
  0x54   : > { %s281_s15 = sshll.u32 %s280_s13, 4  ;;  %s283_s24 = sshll.u32 %s275_s16, 4  ;;  %s282_s15 = int_to_ptr.hbm [resolvable:$true] %s281_s15  ;;  %s284_s24 = int_to_ptr.vmem [resolvable:$true] %s283_s24 }
  0x55   : > { %s272_s23 = scalar_lea.sflag [#allocation9], %s2080_s6  ;;  %s1853_s25 = sshra.s32 %s282_s15, 4  ;;  %s1854_s25 = int_to_ptr.hbm [resolvable:$true] %s1853_s25 }
  0x56   : > { %s1855_s1 = scalar_lea.hbm %s1854_s25, 64  ;;  %s1860_s10 = scalar_lea.hbm %s2397_s3, 128 }
  0x57   : > { %p1856_p4 = scmp.ne.s32.totalorder %s1854_s25, %s1855_s1  ;;  %p1861_p0 = scmp.lt.s32.totalorder %s1854_s25, %s2397_s3 }
  0x58   : > { %p1862_p8 = scmp.lt.s32.totalorder %s1860_s10, %s1855_s1 }
  0x59   : > { %p1858_p5 = pnand %p1856_p4, %p1767_p2 }
  0x5a   : > { %p1863_p10 = por %p1862_p8, %p1861_p0 }
  0x5b   : > { %p1859_p7 = pneg %p1858_p5 }
  0x5d   : > { %p1864_p1 = pnand %p1863_p10, %p1859_p7 }
  0x5f   : > { %1867 = shalt.err (!%p1864_p1)
}
  0x60   : > { %1653 = dma.hbm_to_vmem [thread:$0]  (!%p2088_p13), %s282_s15, 1024, %s284_s24, %s272_s23, %s2419_s26, %s2419_s26, %s1992_s27  }
  0x61   : > { %295 = sbr.rel (%p2125_p3) target bundleno = 1126 (0x466), region = 36  ;;  %s2188_s6 = sand.u32 (!%p2125_p3), 1, %s1981_s19  }
  0x62   : > { %s1433_s8 = sshll.u32 (!%p2125_p3), %s2188_s6, 6  ;;  %s298_s14 = scalar_lea.sflag (!%p2125_p3), [#allocation3], %s2188_s6 }
  0x63   : > { %s2192_s0 = scalar_lea.vmem (!%p2125_p3), [#allocation2], %s1433_s8 }
  0x66   : > { %1956 = dma.done.wait (%p2064_p6), %s298_s14, 1024  }
  0x67   : > { %1958 = vsyncadd (%p2064_p6), %s298_s14, 4294966272  ;;  %s307_s27 = sand.u32 1, %s2046_s22   ;;  %s2199_s11 = scalar_lea.vmem [#allocation5], %s1433_s8 }
  0x68   : > { %s308_s9 = scalar_lea.sflag [#allocation6], %s307_s27 }
  0x69   : > { %1960 = dma.done.wait (%p2064_p6), %s308_s9, 2048  }
  0x6a   : > { %1962 = vsyncadd (%p2064_p6), %s308_s9, 4294965248  ;;  %s321_s26 = scalar_lea.vmem [#allocation7], %s1433_s8  ;;  %s328_s21 = scalar_lea.sflag [#allocation9], %s2188_s6 }
  0x6b   : > { %s2206_s13 = scalar_lea.vmem [#allocation8], %s1433_s8 }
  0x6c   : > { %1964 = dma.done.wait (%p2064_p6), %s328_s21, 1024  }
  0x6d   : > { %1966 = vsyncadd (%p2064_p6), %s328_s21, 4294966272  ;;  %v1618_v0 = vld [vmem:[%s321_s26 + $0x38] sm:$0xff]  ;;  %v1617_v1 = vld [vmem:[%s321_s26 + $0x30] sm:$0xff]  ;;  %s1437_s28 = sshll.u32 %s2188_s6, 7  ;;  %s1627_s16 = sshll.u32 %s2046_s22, 7 }
  0x6e   : > { %523 = vmatpush.bf16.msra.mxu0 %v1618_v0  ;;  %v1616_v2 = vld [vmem:[%s321_s26 + $0x28] sm:$0xff]  ;;  %v1615_v3 = vld [vmem:[%s321_s26 + $0x20] sm:$0xff]  ;;  %v1614_v4 = vld [vmem:[%s321_s26 + $0x18] sm:$0xff]  ;;  %s2255_s15 = scalar_lea.vmem [#allocation11], %s1437_s28  ;;  %s1241_s25 = scalar_lea.hbm %s2399_s5, %s1627_s16 }
  0x6f   : > { %v1613_v5 = vld [vmem:[%s321_s26 + $0x10] sm:$0xff]  ;;  %v1612_v6 = vld [vmem:[%s321_s26 + $0x8] sm:$0xff]  ;;  %v1611_v7 = vld [vmem:[%s321_s26] sm:$0xff]  ;;  %s1242_s1 = sshll.u32 %s2255_s15, 4  ;;  %s1244_s12 = sshll.u32 %s1241_s25, 4  ;;  %s1243_s1 = int_to_ptr.vmem [resolvable:$true] %s1242_s1  ;;  %s1245_s12 = int_to_ptr.hbm [resolvable:$true] %s1244_s12 }
  0x70   : > { %v1603_v8 = vld [vmem:[%s2199_s11] sm:$0xff]  ;;  %v1604_v9 = vld [vmem:[%s2199_s11 + $0x8] sm:$0xff]  ;;  %v1605_v10 = vld [vmem:[%s2199_s11 + $0x10] sm:$0xff]  ;;  %s1213_s17 = scalar_lea.sflag [#allocation12], %s2188_s6  ;;  %s1897_s10 = sshra.s32 %s1245_s12, 4  ;;  %s1898_s10 = int_to_ptr.hbm [resolvable:$true] %s1897_s10 }
  0x71   : > { %v1606_v11 = vld [vmem:[%s2199_s11 + $0x18] sm:$0xff]  ;;  %v1607_v12 = vld [vmem:[%s2199_s11 + $0x20] sm:$0xff]  ;;  %v1608_v13 = vld [vmem:[%s2199_s11 + $0x28] sm:$0xff]  ;;  %s1899_s20 = scalar_lea.hbm %s1898_s10, 128  ;;  %s1903_s14 = scalar_lea.hbm %s2399_s5, 256 }
  0x72   : > { %524 = vmatpush.bf16.msra.mxu0 %v1617_v1  ;;  %v1609_v14 = vld [vmem:[%s2199_s11 + $0x30] sm:$0xff]  ;;  %v1610_v15 = vld [vmem:[%s2199_s11 + $0x38] sm:$0xff]  ;;  %v2221_v40 = vld [vmem:[%s2192_s0] sm:$0xff]  ;;  %p1900_p6 = scmp.ne.s32.totalorder %s1898_s10, %s1899_s20  ;;  %p1904_p3 = scmp.lt.s32.totalorder %s1898_s10, %s2399_s5 }
  0x73   : > { %v2225_v41 = vld [vmem:[%s2192_s0 + $0x8] sm:$0xff]  ;;  %v2229_v42 = vld [vmem:[%s2192_s0 + $0x10] sm:$0xff]  ;;  %v2233_v43 = vld [vmem:[%s2192_s0 + $0x18] sm:$0xff]  ;;  %p1905_p4 = scmp.lt.s32.totalorder %s1903_s14, %s1899_s20 }
  0x74   : > { %v2237_v44 = vld [vmem:[%s2192_s0 + $0x20] sm:$0xff]  ;;  %v2241_v45 = vld [vmem:[%s2192_s0 + $0x28] sm:$0xff]  ;;  %v2245_v46 = vld [vmem:[%s2192_s0 + $0x30] sm:$0xff]  ;;  %p1901_p13 = pnand %p1900_p6, %p2071_p11 }
  0x75   : > { %v2249_v47 = vld [vmem:[%s2192_s0 + $0x38] sm:$0xff]  ;;  %p1906_p5 = por %p1905_p4, %p1904_p3 }
  0x76   : > { %525 = vmatpush.bf16.msra.mxu0 %v1616_v2  ;;  %p1902_p2 = pneg %p1901_p13 }
  0x78   : > { %p1907_p7 = pnand %p1906_p5, %p1902_p2 }
  0x7a   : > { %526 = vmatpush.bf16.msra.mxu0 %v1615_v3 }
  0x7e   : > { %527 = vmatpush.bf16.msra.mxu0 %v1614_v4 }
  0x82   : > { %528 = vmatpush.bf16.msra.mxu0 %v1613_v5 }
  0x86   : > { %529 = vmatpush.bf16.msra.mxu0 %v1612_v6 }
  0x8a   : > { %530 = vmatpush.bf16.msra.mxu0 %v1611_v7 }
  0x8d   : > { %531 = vmatmul.bf16.vlgmr.msra.gmra.mxu0 %v1603_v8 }
  0x9d   : > { %536 = vmatmul.bf16.gmra.mxu0 %v1604_v9 }
  0xad   : > { %541 = vmatmul.bf16.gmra.mxu0 %v1605_v10 }
  0xbd   : > { %546 = vmatmul.bf16.gmra.mxu0 %v1606_v11 }
  0xcd   : > { %551 = vmatmul.bf16.gmra.mxu0 %v1607_v12 }
  0xdd   : > { %556 = vmatmul.bf16.gmra.mxu0 %v1608_v13 }
  0xed   : > { %561 = vmatmul.bf16.gmra.mxu0 %v1609_v14 }
  0xfd   : > { %566 = vmatmul.bf16.gmra.mxu0 %v1610_v15 }
 0x10a   : > { %v532_v16 = vpop.f32.mrf.mxu0 }
 0x112   : > { %v534_v17 = vpop.f32.mrf.mxu0 }
 0x113   : > { %v572_v18 = vpack.c.bf16 %v534_v17, %v532_v16 }
 0x11a   : > { %v537_v19 = vpop.f32.mrf.mxu0 }
 0x122   : > { %v539_v20 = vpop.f32.mrf.mxu0 }
 0x123   : > { %v573_v21 = vpack.c.bf16 %v539_v20, %v537_v19 }
 0x12a   : > { %v542_v22 = vpop.f32.mrf.mxu0 }
 0x132   : > { %v544_v23 = vpop.f32.mrf.mxu0 }
 0x133   : > { %v574_v24 = vpack.c.bf16 %v544_v23, %v542_v22 }
 0x13a   : > { %v547_v25 = vpop.f32.mrf.mxu0 }
 0x142   : > { %v549_v26 = vpop.f32.mrf.mxu0 }
 0x143   : > { %v575_v27 = vpack.c.bf16 %v549_v26, %v547_v25  ;;  %v1625_v25 = vld [vmem:[%s2206_s13 + $0x30] sm:$0xff]  ;;  %v1624_v26 = vld [vmem:[%s2206_s13 + $0x28] sm:$0xff] }
 0x14a   : > { %v552_v28 = vpop.f32.mrf.mxu0 }
 0x152   : > { %v554_v29 = vpop.f32.mrf.mxu0 }
 0x153   : > { %v576_v39 = vpack.c.bf16 %v554_v29, %v552_v28  ;;  %v1622_v28 = vld [vmem:[%s2206_s13 + $0x18] sm:$0xff]  ;;  %v1621_v29 = vld [vmem:[%s2206_s13 + $0x10] sm:$0xff] }
 0x15a   : > { %v557_v30 = vpop.f32.mrf.mxu0 }
 0x162   : > { %v559_v31 = vpop.f32.mrf.mxu0 }
 0x163   : > { %v577_v38 = vpack.c.bf16 %v559_v31, %v557_v30  ;;  %v1620_v30 = vld [vmem:[%s2206_s13 + $0x8] sm:$0xff]  ;;  %v1619_v31 = vld [vmem:[%s2206_s13] sm:$0xff] }
 0x16a   : > { %v562_v32 = vpop.f32.mrf.mxu0 }
 0x172   : > { %v564_v33 = vpop.f32.mrf.mxu0 }
 0x173   : > { %v578_v37 = vpack.c.bf16 %v564_v33, %v562_v32 }
 0x17a   : > { %v567_v34 = vpop.f32.mrf.mxu0 }
 0x182   : > { %v569_v35 = vpop.f32.mrf.mxu0 }
 0x183   : > { %v579_v36 = vpack.c.bf16 %v569_v35, %v567_v34 }
 0x185   : > { %628 = vmatpush.bf16.msra.mxu1 %v579_v36 }
 0x189   : > { %629 = vmatpush.bf16.msra.mxu1 %v578_v37 }
 0x18d   : > { %630 = vmatpush.bf16.msra.mxu1 %v577_v38 }
 0x191   : > { %631 = vmatpush.bf16.msra.mxu1 %v576_v39 }
 0x195   : > { %632 = vmatpush.bf16.msra.mxu1 %v575_v27  ;;  %v1623_v27 = vld [vmem:[%s2206_s13 + $0x20] sm:$0xff] }
 0x199   : > { %633 = vmatpush.bf16.msra.mxu1 %v574_v24  ;;  %v1626_v24 = vld [vmem:[%s2206_s13 + $0x38] sm:$0xff] }
 0x19a   : > { %838 = vmatpush.bf16.msra.mxu3 %v1626_v24 }
 0x19d   : > { %634 = vmatpush.bf16.msra.mxu1 %v573_v21 }
 0x19e   : > { %839 = vmatpush.bf16.msra.mxu3 %v1625_v25 }
 0x1a1   : > { %635 = vmatpush.bf16.msra.mxu1 %v572_v18 }
 0x1a2   : > { %840 = vmatpush.bf16.msra.mxu3 %v1624_v26 }
 0x1a4   : > { %636 = vmatmul.bf16.vlgmr.msra.gmra.mxu1 %v2221_v40 }
 0x1a6   : > { %841 = vmatpush.bf16.msra.mxu3 %v1623_v27 }
 0x1aa   : > { %842 = vmatpush.bf16.msra.mxu3 %v1622_v28 }
 0x1ae   : > { %843 = vmatpush.bf16.msra.mxu3 %v1621_v29 }
 0x1b2   : > { %844 = vmatpush.bf16.msra.mxu3 %v1620_v30 }
 0x1b4   : > { %641 = vmatmul.bf16.gmra.mxu1 %v2225_v41 }
 0x1b6   : > { %845 = vmatpush.bf16.msra.mxu3 %v1619_v31 }
 0x1c4   : > { %646 = vmatmul.bf16.gmra.mxu1 %v2229_v42 }
 0x1d4   : > { %651 = vmatmul.bf16.gmra.mxu1 %v2233_v43 }
 0x1e4   : > { %656 = vmatmul.bf16.gmra.mxu1 %v2237_v44 }
 0x1f4   : > { %661 = vmatmul.bf16.gmra.mxu1 %v2241_v45 }
 0x204   : > { %666 = vmatmul.bf16.gmra.mxu1 %v2245_v46 }
 0x214   : > { %671 = vmatmul.bf16.gmra.mxu1 %v2249_v47 }
 0x221   : > { %v637_v48 = vpop.f32.mrf.mxu1 }
 0x222   : > { %v677_v49 = vmax.f32 %v637_v48, 0.0 }
 0x224   : > { %693 = vst [vmem:[%s2255_s15] sm:$0xff] %v677_v49 }
 0x229   : > { %v639_v50 = vpop.f32.mrf.mxu1 }
 0x22a   : > { %v678_v51 = vmax.f32 %v639_v50, 0.0 }
 0x22c   : > { %694 = vst [vmem:[%s2255_s15 + $0x8] sm:$0xff] %v678_v51  ;;  %v709_v52 = vpack.c.bf16 %v678_v51, %v677_v49 }
 0x231   : > { %v642_v53 = vpop.f32.mrf.mxu1 }
 0x232   : > { %v679_v54 = vmax.f32 %v642_v53, 0.0 }
 0x234   : > { %695 = vst [vmem:[%s2255_s15 + $0x10] sm:$0xff] %v679_v54 }
 0x239   : > { %v644_v55 = vpop.f32.mrf.mxu1 }
 0x23a   : > { %v680_v56 = vmax.f32 %v644_v55, 0.0 }
 0x23c   : > { %696 = vst [vmem:[%s2255_s15 + $0x18] sm:$0xff] %v680_v56  ;;  %v710_v57 = vpack.c.bf16 %v680_v56, %v679_v54 }
 0x241   : > { %v647_v58 = vpop.f32.mrf.mxu1 }
 0x242   : > { %v681_v59 = vmax.f32 %v647_v58, 0.0 }
 0x244   : > { %697 = vst [vmem:[%s2255_s15 + $0x20] sm:$0xff] %v681_v59 }
 0x249   : > { %v649_v60 = vpop.f32.mrf.mxu1 }
 0x24a   : > { %v682_v61 = vmax.f32 %v649_v60, 0.0 }
 0x24c   : > { %698 = vst [vmem:[%s2255_s15 + $0x28] sm:$0xff] %v682_v61  ;;  %v711_v62 = vpack.c.bf16 %v682_v61, %v681_v59 }
 0x251   : > { %v652_v63 = vpop.f32.mrf.mxu1 }
 0x252   : > { %v683_v0 = vmax.f32 %v652_v63, 0.0 }
 0x254   : > { %699 = vst [vmem:[%s2255_s15 + $0x30] sm:$0xff] %v683_v0 }
 0x259   : > { %v654_v1 = vpop.f32.mrf.mxu1 }
 0x25a   : > { %v684_v2 = vmax.f32 %v654_v1, 0.0 }
 0x25c   : > { %700 = vst [vmem:[%s2255_s15 + $0x38] sm:$0xff] %v684_v2  ;;  %v712_v3 = vpack.c.bf16 %v684_v2, %v683_v0 }
 0x261   : > { %v657_v4 = vpop.f32.mrf.mxu1 }
 0x262   : > { %v685_v5 = vmax.f32 %v657_v4, 0.0 }
 0x264   : > { %701 = vst [vmem:[%s2255_s15 + $0x40] sm:$0xff] %v685_v5 }
 0x269   : > { %v659_v6 = vpop.f32.mrf.mxu1 }
 0x26a   : > { %v686_v7 = vmax.f32 %v659_v6, 0.0 }
 0x26c   : > { %702 = vst [vmem:[%s2255_s15 + $0x48] sm:$0xff] %v686_v7  ;;  %v713_v23 = vpack.c.bf16 %v686_v7, %v685_v5 }
 0x271   : > { %v662_v8 = vpop.f32.mrf.mxu1 }
 0x272   : > { %v687_v9 = vmax.f32 %v662_v8, 0.0 }
 0x274   : > { %703 = vst [vmem:[%s2255_s15 + $0x50] sm:$0xff] %v687_v9 }
 0x279   : > { %v664_v10 = vpop.f32.mrf.mxu1 }
 0x27a   : > { %v688_v11 = vmax.f32 %v664_v10, 0.0 }
 0x27c   : > { %704 = vst [vmem:[%s2255_s15 + $0x58] sm:$0xff] %v688_v11  ;;  %v714_v22 = vpack.c.bf16 %v688_v11, %v687_v9 }
 0x281   : > { %v667_v12 = vpop.f32.mrf.mxu1 }
 0x282   : > { %v689_v13 = vmax.f32 %v667_v12, 0.0 }
 0x284   : > { %705 = vst [vmem:[%s2255_s15 + $0x60] sm:$0xff] %v689_v13 }
 0x289   : > { %v669_v14 = vpop.f32.mrf.mxu1 }
 0x28a   : > { %v690_v15 = vmax.f32 %v669_v14, 0.0 }
 0x28c   : > { %706 = vst [vmem:[%s2255_s15 + $0x68] sm:$0xff] %v690_v15  ;;  %v715_v21 = vpack.c.bf16 %v690_v15, %v689_v13 }
 0x291   : > { %v672_v16 = vpop.f32.mrf.mxu1 }
 0x292   : > { %v691_v17 = vmax.f32 %v672_v16, 0.0 }
 0x294   : > { %707 = vst [vmem:[%s2255_s15 + $0x70] sm:$0xff] %v691_v17 }
 0x299   : > { %v674_v18 = vpop.f32.mrf.mxu1 }
 0x29a   : > { %v692_v19 = vmax.f32 %v674_v18, 0.0 }
 0x29c   : > { %708 = vst [vmem:[%s2255_s15 + $0x78] sm:$0xff] %v692_v19  ;;  %v716_v20 = vpack.c.bf16 %v692_v19, %v691_v17 }
 0x29e   : > { %717 = vmatpush.bf16.msra.mxu2 %v716_v20 }
 0x2a2   : > { %718 = vmatpush.bf16.msra.mxu2 %v715_v21 }
 0x2a6   : > { %719 = vmatpush.bf16.msra.mxu2 %v714_v22 }
 0x2aa   : > { %720 = vmatpush.bf16.msra.mxu2 %v713_v23 }
 0x2ae   : > { %721 = vmatpush.bf16.msra.mxu2 %v712_v3 }
 0x2b2   : > { %722 = vmatpush.bf16.msra.mxu2 %v711_v62 }
 0x2b6   : > { %723 = vmatpush.bf16.msra.mxu2 %v710_v57 }
 0x2ba   : > { %724 = vmatpush.bf16.msra.mxu2 %v709_v52 }
 0x2bd   : > { %725 = vmatmul.bf16.vlgmr.msra.gmra.mxu2 %v2221_v40 }
 0x2cd   : > { %730 = vmatmul.bf16.gmra.mxu2 %v2225_v41 }
 0x2dd   : > { %735 = vmatmul.bf16.gmra.mxu2 %v2229_v42 }
 0x2ed   : > { %740 = vmatmul.bf16.gmra.mxu2 %v2233_v43 }
 0x2fd   : > { %745 = vmatmul.bf16.gmra.mxu2 %v2237_v44 }
 0x30d   : > { %750 = vmatmul.bf16.gmra.mxu2 %v2241_v45 }
 0x31d   : > { %755 = vmatmul.bf16.gmra.mxu2 %v2245_v46 }
 0x32d   : > { %760 = vmatmul.bf16.gmra.mxu2 %v2249_v47 }
 0x340   : > { %v726_v32 = vpop.f32.mrf.mxu2 }
 0x348   : > { %v728_v33 = vpop.f32.mrf.mxu2 }
 0x349   : > { %v766_v34 = vpack.c.bf16 %v728_v33, %v726_v32 }
 0x34b   : > { %846 = vmatmul.bf16.vlgmr.msra.gmra.mxu3 %v766_v34 }
 0x350   : > { %v731_v35 = vpop.f32.mrf.mxu2 }
 0x358   : > { %v733_v36 = vpop.f32.mrf.mxu2 }
 0x359   : > { %v767_v37 = vpack.c.bf16 %v733_v36, %v731_v35 }
 0x35b   : > { %851 = vmatmul.bf16.gmra.mxu3 %v767_v37 }
 0x360   : > { %v736_v38 = vpop.f32.mrf.mxu2 }
 0x368   : > { %v738_v39 = vpop.f32.mrf.mxu2 }
 0x369   : > { %v768_v40 = vpack.c.bf16 %v738_v39, %v736_v38 }
 0x36b   : > { %856 = vmatmul.bf16.gmra.mxu3 %v768_v40 }
 0x370   : > { %v741_v41 = vpop.f32.mrf.mxu2 }
 0x378   : > { %v743_v42 = vpop.f32.mrf.mxu2 }
 0x379   : > { %v769_v43 = vpack.c.bf16 %v743_v42, %v741_v41 }
 0x37b   : > { %861 = vmatmul.bf16.gmra.mxu3 %v769_v43 }
 0x380   : > { %v746_v44 = vpop.f32.mrf.mxu2 }
 0x388   : > { %v748_v45 = vpop.f32.mrf.mxu2 }
 0x389   : > { %v770_v46 = vpack.c.bf16 %v748_v45, %v746_v44 }
 0x38b   : > { %866 = vmatmul.bf16.gmra.mxu3 %v770_v46 }
 0x390   : > { %v751_v47 = vpop.f32.mrf.mxu2 }
 0x398   : > { %v753_v48 = vpop.f32.mrf.mxu2 }
 0x399   : > { %v771_v49 = vpack.c.bf16 %v753_v48, %v751_v47 }
 0x39b   : > { %871 = vmatmul.bf16.gmra.mxu3 %v771_v49 }
 0x3a0   : > { %v756_v50 = vpop.f32.mrf.mxu2 }
 0x3a8   : > { %v758_v51 = vpop.f32.mrf.mxu2 }
 0x3a9   : > { %v772_v52 = vpack.c.bf16 %v758_v51, %v756_v50 }
 0x3ab   : > { %876 = vmatmul.bf16.gmra.mxu3 %v772_v52 }
 0x3b0   : > { %v761_v53 = vpop.f32.mrf.mxu2 }
 0x3b8   : > { %v763_v54 = vpop.f32.mrf.mxu2 }
 0x3b9   : > { %v773_v55 = vpack.c.bf16 %v763_v54, %v761_v53 }
 0x3bb   : > { %881 = vmatmul.bf16.gmra.mxu3 %v773_v55 }
 0x3ce   : > { %v847_v56 = vpop.f32.mrf.mxu3 }
 0x3cf   : > { %v1567_v57 = vmul.f32 -1.442695, %v847_v56 }
 0x3d1   : > { %1699 = vpow2.f32 %v1567_v57 }
 0x3d6   : > { %v849_v58 = vpop.f32.mrf.mxu3 }
 0x3d7   : > { %v1700_v59 = vpop.eup %1699  ;;  %v1568_v60 = vmul.f32 -1.442695, %v849_v58 }
 0x3d8   : > { %v935_v61 = vadd.f32 1.0, %v1700_v59 }
 0x3d9   : > { %1701 = vpow2.f32 %v1568_v60 }
 0x3da   : > { %1703 = vrcp.f32 %v935_v61  ;;  %v962_v5 = vand.u32 2147483648, %v935_v61  ;;  %v960_v7 = vand.u32 2147483647, %v935_v61  ;;  %vm956_vm1 = vweird.f32 %v935_v61 }
 0x3dc   : > { %v963_v14 = vor.u32 1.1754944e-38, %v962_v5  ;;  %vm2307_vm3 = vcmp.eq.f32.partialorder %v960_v7, 8.507059e+37 }
 0x3de   : > { %v852_v62 = vpop.f32.mrf.mxu3 }
 0x3df   : > { %v1702_v63 = vpop.eup %1701  ;;  %v1569_v0 = vmul.f32 -1.442695, %v852_v62 }
 0x3e0   : > { %v1704_v1 = vpop.eup %1703  ;;  %v2289_v2 = vadd.f32 1.0, %v1702_v63 }
 0x3e1   : > { %v952_v3 = vmul.f32 %v1704_v1, %v935_v61  ;;  %1705 = vpow2.f32 %v1569_v0  ;;  %vm957_vm0 = vweird.f32 %v1704_v1 }
 0x3e2   : > { %1707 = vrcp.f32 %v2289_v2  ;;  %vm2299_vm2 = vmor %vm956_vm1, %vm957_vm0 }
 0x3e3   : > { %v953_v4 = vsub.f32 1.0, %v952_v3 }
 0x3e5   : > { %v954_v6 = vmul.f32 %v1704_v1, %v953_v4 }
 0x3e6   : > { %v854_v8 = vpop.f32.mrf.mxu3 }
 0x3e7   : > { %v1706_v9 = vpop.eup %1705  ;;  %v955_v10 = vadd.f32 %v1704_v1, %v954_v6  ;;  %v1570_v11 = vmul.f32 -1.442695, %v854_v8 }
 0x3e8   : > { %v1708_v12 = vpop.eup %1707  ;;  %v2303_v15 = vadd.f32 1.0, %v1706_v9 }
 0x3e9   : > { %v959_v16 = vsel %vm2299_vm2, %v1704_v1, %v955_v10  ;;  %v967_v18 = vmul.f32 %v1708_v12, %v2289_v2  ;;  %1709 = vpow2.f32 %v1570_v11 }
 0x3ea   : > { %1910 = shalt.err (!%p1907_p7)
}
 0x3eb   : > { %s1993_s9 = smov 128   ;;  %s1994_s11 = smov 8   ;;  %v964_v19 = vsel %vm2307_vm3, %v963_v14, %v959_v16  ;;  %1711 = vrcp.f32 %v2303_v15  ;;  %v968_v20 = vsub.f32 1.0, %v967_v18  ;;  %v977_v21 = vand.u32 2147483648, %v2289_v2 }
 0x3ec   : > { %1638 = dma.vmem_to_hbm [thread:$0]  (%p2071_p11), %s1243_s1, 2048, %s1245_s12, %s1213_s17, %s1993_s9, %s1993_s9, %s1994_s11   ;;  %vm972_vm4 = vweird.f32 %v1708_v12  ;;  %v975_v23 = vand.u32 2147483647, %v2289_v2  ;;  %vm971_vm5 = vweird.f32 %v2289_v2  ;;  %v992_v35 = vand.u32 2147483648, %v2303_v15 }
 0x3ed   : > { %s2331_s26 = scalar_lea.vmem [#allocation10], %s1437_s28  ;;  %v969_v22 = vmul.f32 %v1708_v12, %v968_v20  ;;  %vm973_vm6 = vmor %vm971_vm5, %vm972_vm4  ;;  %v978_v29 = vor.u32 1.1754944e-38, %v977_v21  ;;  %v990_v37 = vand.u32 2147483647, %v2303_v15  ;;  %vm986_vm9 = vweird.f32 %v2303_v15  ;;  %s1224_s28 = scalar_lea.hbm %s2398_s4, %s1627_s16 }
 0x3ee   : > { %1191 = vst [vmem:[%s2331_s26] sm:$0xff] %v964_v19  ;;  %v857_v24 = vpop.f32.mrf.mxu3  ;;  %vm976_vm7 = vcmp.eq.f32.partialorder %v975_v23, 8.507059e+37  ;;  %v993_v43 = vor.u32 1.1754944e-38, %v992_v35  ;;  %s1225_s15 = sshll.u32 %s2331_s26, 4  ;;  %s1227_s24 = sshll.u32 %s1224_s28, 4  ;;  %s1226_s15 = int_to_ptr.vmem [resolvable:$true] %s1225_s15  ;;  %s1228_s24 = int_to_ptr.hbm [resolvable:$true] %s1227_s24 }
 0x3ef   : > { %v1710_v25 = vpop.eup %1709  ;;  %v970_v26 = vadd.f32 %v1708_v12, %v969_v22  ;;  %v1571_v27 = vmul.f32 -1.442695, %v857_v24  ;;  %vm991_vm11 = vcmp.eq.f32.partialorder %v990_v37, 8.507059e+37  ;;  %s1208_s22 = scalar_lea.sflag [#allocation4], %s2188_s6  ;;  %s1925_s16 = sshra.s32 %s1228_s24, 4  ;;  %s1926_s16 = int_to_ptr.hbm [resolvable:$true] %s1925_s16 }
 0x3f0   : > { %v938_v30 = vadd.f32 1.0, %v1710_v25  ;;  %s1927_s23 = scalar_lea.hbm %s1926_s16, 128  ;;  %s1931_s12 = scalar_lea.hbm %s2398_s4, 256 }
 0x3f1   : > { %v1712_v28 = vpop.eup %1711  ;;  %v974_v31 = vsel %vm973_vm6, %v1708_v12, %v970_v26  ;;  %1713 = vpow2.f32 %v1571_v27  ;;  %p1928_p0 = scmp.ne.s32.totalorder %s1926_s16, %s1927_s23  ;;  %p1932_p1 = scmp.lt.s32.totalorder %s1926_s16, %s2398_s4 }
 0x3f2   : > { %v982_v32 = vmul.f32 %v1712_v28, %v2303_v15  ;;  %v979_v33 = vsel %vm976_vm7, %v978_v29, %v974_v31  ;;  %1715 = vrcp.f32 %v938_v30  ;;  %vm987_vm8 = vweird.f32 %v1712_v28  ;;  %p1933_p6 = scmp.lt.s32.totalorder %s1931_s12, %s1927_s23 }
 0x3f3   : > { %1192 = vst [vmem:[%s2331_s26 + $0x8] sm:$0xff] %v979_v33  ;;  %vm988_vm10 = vmor %vm986_vm9, %vm987_vm8  ;;  %v1007_v49 = vand.u32 2147483648, %v938_v30  ;;  %v1005_v51 = vand.u32 2147483647, %v938_v30  ;;  %vm1001_vm13 = vweird.f32 %v938_v30  ;;  %p1929_p8 = pnand %p1928_p0, %p2071_p11 }
 0x3f4   : > { %v983_v34 = vsub.f32 1.0, %v982_v32  ;;  %p1934_p13 = por %p1933_p6, %p1932_p1 }
 0x3f5   : > { %v1008_v57 = vor.u32 1.1754944e-38, %v1007_v49  ;;  %vm1006_vm15 = vcmp.eq.f32.partialorder %v1005_v51, 8.507059e+37  ;;  %p1930_p10 = pneg %p1929_p8 }
 0x3f6   : > { %v984_v36 = vmul.f32 %v1712_v28, %v983_v34  ;;  %v859_v38 = vpop.f32.mrf.mxu3 }
 0x3f7   : > { %v1714_v39 = vpop.eup %1713  ;;  %v1572_v41 = vmul.f32 -1.442695, %v859_v38  ;;  %p1935_p2 = pnand %p1934_p13, %p1930_p10 }
 0x3f8   : > { %v985_v40 = vadd.f32 %v1712_v28, %v984_v36  ;;  %v1716_v42 = vpop.eup %1715  ;;  %v939_v44 = vadd.f32 1.0, %v1714_v39 }
 0x3f9   : > { %v997_v46 = vmul.f32 %v1716_v42, %v938_v30  ;;  %1717 = vpow2.f32 %v1572_v41  ;;  %vm1002_vm12 = vweird.f32 %v1716_v42 }
 0x3fa   : > { %v989_v45 = vsel %vm988_vm10, %v1712_v28, %v985_v40  ;;  %1719 = vrcp.f32 %v939_v44  ;;  %vm1003_vm14 = vmor %vm1001_vm13, %vm1002_vm12  ;;  %v1022_v63 = vand.u32 2147483648, %v939_v44  ;;  %v1020_v1 = vand.u32 2147483647, %v939_v44 }
 0x3fb   : > { %v994_v47 = vsel %vm991_vm11, %v993_v43, %v989_v45  ;;  %v998_v48 = vsub.f32 1.0, %v997_v46  ;;  %vm1016_vm1 = vweird.f32 %v939_v44 }
 0x3fc   : > { %1193 = vst [vmem:[%s2331_s26 + $0x10] sm:$0xff] %v994_v47  ;;  %v1023_v7 = vor.u32 1.1754944e-38, %v1022_v63  ;;  %vm1021_vm3 = vcmp.eq.f32.partialorder %v1020_v1, 8.507059e+37 }
 0x3fd   : > { %v999_v50 = vmul.f32 %v1716_v42, %v998_v48 }
 0x3fe   : > { %v862_v52 = vpop.f32.mrf.mxu3 }
 0x3ff   : > { %v1718_v53 = vpop.eup %1717  ;;  %v1000_v54 = vadd.f32 %v1716_v42, %v999_v50  ;;  %v1573_v55 = vmul.f32 -1.442695, %v862_v52 }
 0x400   : > { %v1720_v56 = vpop.eup %1719  ;;  %v940_v58 = vadd.f32 1.0, %v1718_v53 }
 0x401   : > { %v1004_v59 = vsel %vm1003_vm14, %v1716_v42, %v1000_v54  ;;  %v1012_v60 = vmul.f32 %v1720_v56, %v939_v44  ;;  %1721 = vpow2.f32 %v1573_v55  ;;  %vm1017_vm0 = vweird.f32 %v1720_v56 }
 0x402   : > { %v1009_v61 = vsel %vm1006_vm15, %v1008_v57, %v1004_v59  ;;  %1723 = vrcp.f32 %v940_v58  ;;  %vm1018_vm2 = vmor %vm1016_vm1, %vm1017_vm0  ;;  %v1037_v13 = vand.u32 2147483648, %v940_v58  ;;  %v1035_v15 = vand.u32 2147483647, %v940_v58 }
 0x403   : > { %1194 = vst [vmem:[%s2331_s26 + $0x18] sm:$0xff] %v1009_v61  ;;  %v1013_v62 = vsub.f32 1.0, %v1012_v60  ;;  %vm1031_vm5 = vweird.f32 %v940_v58 }
 0x404   : > { %v1038_v21 = vor.u32 1.1754944e-38, %v1037_v13  ;;  %vm1036_vm7 = vcmp.eq.f32.partialorder %v1035_v15, 8.507059e+37 }
 0x405   : > { %v1014_v0 = vmul.f32 %v1720_v56, %v1013_v62 }
 0x406   : > { %v864_v2 = vpop.f32.mrf.mxu3 }
 0x407   : > { %v1722_v3 = vpop.eup %1721  ;;  %v1015_v4 = vadd.f32 %v1720_v56, %v1014_v0  ;;  %v1574_v5 = vmul.f32 -1.442695, %v864_v2 }
 0x408   : > { %v1724_v6 = vpop.eup %1723  ;;  %v941_v8 = vadd.f32 1.0, %v1722_v3 }
 0x409   : > { %v1019_v9 = vsel %vm1018_vm2, %v1720_v56, %v1015_v4  ;;  %v1027_v10 = vmul.f32 %v1724_v6, %v940_v58  ;;  %1725 = vpow2.f32 %v1574_v5  ;;  %vm1032_vm4 = vweird.f32 %v1724_v6 }
 0x40a   : > { %v1024_v11 = vsel %vm1021_vm3, %v1023_v7, %v1019_v9  ;;  %1727 = vrcp.f32 %v941_v8  ;;  %vm1033_vm6 = vmor %vm1031_vm5, %vm1032_vm4  ;;  %v1052_v27 = vand.u32 2147483648, %v941_v8  ;;  %v1050_v29 = vand.u32 2147483647, %v941_v8 }
 0x40b   : > { %1195 = vst [vmem:[%s2331_s26 + $0x20] sm:$0xff] %v1024_v11  ;;  %v1028_v12 = vsub.f32 1.0, %v1027_v10  ;;  %vm1046_vm9 = vweird.f32 %v941_v8 }
 0x40c   : > { %v1053_v35 = vor.u32 1.1754944e-38, %v1052_v27  ;;  %vm1051_vm11 = vcmp.eq.f32.partialorder %v1050_v29, 8.507059e+37 }
 0x40d   : > { %v1029_v14 = vmul.f32 %v1724_v6, %v1028_v12 }
 0x40e   : > { %v867_v16 = vpop.f32.mrf.mxu3 }
 0x40f   : > { %v1726_v17 = vpop.eup %1725  ;;  %v1030_v18 = vadd.f32 %v1724_v6, %v1029_v14  ;;  %v1575_v19 = vmul.f32 -1.442695, %v867_v16 }
 0x410   : > { %v1728_v20 = vpop.eup %1727  ;;  %v942_v22 = vadd.f32 1.0, %v1726_v17 }
 0x411   : > { %v1034_v23 = vsel %vm1033_vm6, %v1724_v6, %v1030_v18  ;;  %v1042_v24 = vmul.f32 %v1728_v20, %v941_v8  ;;  %1729 = vpow2.f32 %v1575_v19  ;;  %vm1047_vm8 = vweird.f32 %v1728_v20 }
 0x412   : > { %v1039_v25 = vsel %vm1036_vm7, %v1038_v21, %v1034_v23  ;;  %1731 = vrcp.f32 %v942_v22  ;;  %vm1048_vm10 = vmor %vm1046_vm9, %vm1047_vm8  ;;  %v1067_v41 = vand.u32 2147483648, %v942_v22  ;;  %v1065_v43 = vand.u32 2147483647, %v942_v22 }
 0x413   : > { %1196 = vst [vmem:[%s2331_s26 + $0x28] sm:$0xff] %v1039_v25  ;;  %v1043_v26 = vsub.f32 1.0, %v1042_v24  ;;  %vm1061_vm13 = vweird.f32 %v942_v22 }
 0x414   : > { %v1068_v49 = vor.u32 1.1754944e-38, %v1067_v41  ;;  %vm1066_vm15 = vcmp.eq.f32.partialorder %v1065_v43, 8.507059e+37 }
 0x415   : > { %v1044_v28 = vmul.f32 %v1728_v20, %v1043_v26 }
 0x416   : > { %v869_v30 = vpop.f32.mrf.mxu3 }
 0x417   : > { %v1730_v31 = vpop.eup %1729  ;;  %v1045_v32 = vadd.f32 %v1728_v20, %v1044_v28  ;;  %v1576_v33 = vmul.f32 -1.442695, %v869_v30 }
 0x418   : > { %v1732_v34 = vpop.eup %1731  ;;  %v943_v36 = vadd.f32 1.0, %v1730_v31 }
 0x419   : > { %v1049_v37 = vsel %vm1048_vm10, %v1728_v20, %v1045_v32  ;;  %v1057_v38 = vmul.f32 %v1732_v34, %v942_v22  ;;  %1733 = vpow2.f32 %v1576_v33  ;;  %vm1062_vm12 = vweird.f32 %v1732_v34 }
 0x41a   : > { %v1054_v39 = vsel %vm1051_vm11, %v1053_v35, %v1049_v37  ;;  %1735 = vrcp.f32 %v943_v36  ;;  %vm1063_vm14 = vmor %vm1061_vm13, %vm1062_vm12  ;;  %v1082_v55 = vand.u32 2147483648, %v943_v36  ;;  %v1080_v57 = vand.u32 2147483647, %v943_v36 }
 0x41b   : > { %1197 = vst [vmem:[%s2331_s26 + $0x30] sm:$0xff] %v1054_v39  ;;  %v1058_v40 = vsub.f32 1.0, %v1057_v38  ;;  %vm1076_vm1 = vweird.f32 %v943_v36 }
 0x41c   : > { %v1083_v63 = vor.u32 1.1754944e-38, %v1082_v55  ;;  %vm1081_vm3 = vcmp.eq.f32.partialorder %v1080_v57, 8.507059e+37 }
 0x41d   : > { %v1059_v42 = vmul.f32 %v1732_v34, %v1058_v40 }
 0x41e   : > { %v872_v44 = vpop.f32.mrf.mxu3 }
 0x41f   : > { %v1734_v45 = vpop.eup %1733  ;;  %v1060_v46 = vadd.f32 %v1732_v34, %v1059_v42  ;;  %v1577_v47 = vmul.f32 -1.442695, %v872_v44 }
 0x420   : > { %v1736_v48 = vpop.eup %1735  ;;  %v944_v50 = vadd.f32 1.0, %v1734_v45 }
 0x421   : > { %v1064_v51 = vsel %vm1063_vm14, %v1732_v34, %v1060_v46  ;;  %v1072_v52 = vmul.f32 %v1736_v48, %v943_v36  ;;  %1737 = vpow2.f32 %v1577_v47  ;;  %vm1077_vm0 = vweird.f32 %v1736_v48 }
 0x422   : > { %v1069_v53 = vsel %vm1066_vm15, %v1068_v49, %v1064_v51  ;;  %1739 = vrcp.f32 %v944_v50  ;;  %vm1078_vm2 = vmor %vm1076_vm1, %vm1077_vm0  ;;  %v1097_v5 = vand.u32 2147483648, %v944_v50  ;;  %v1095_v7 = vand.u32 2147483647, %v944_v50 }
 0x423   : > { %1198 = vst [vmem:[%s2331_s26 + $0x38] sm:$0xff] %v1069_v53  ;;  %v1073_v54 = vsub.f32 1.0, %v1072_v52  ;;  %vm1091_vm5 = vweird.f32 %v944_v50 }
 0x424   : > { %v1098_v13 = vor.u32 1.1754944e-38, %v1097_v5  ;;  %vm1096_vm7 = vcmp.eq.f32.partialorder %v1095_v7, 8.507059e+37 }
 0x425   : > { %v1074_v56 = vmul.f32 %v1736_v48, %v1073_v54 }
 0x426   : > { %v874_v58 = vpop.f32.mrf.mxu3 }
 0x427   : > { %v1738_v59 = vpop.eup %1737  ;;  %v1075_v60 = vadd.f32 %v1736_v48, %v1074_v56  ;;  %v1578_v61 = vmul.f32 -1.442695, %v874_v58 }
 0x428   : > { %v1740_v62 = vpop.eup %1739  ;;  %v945_v0 = vadd.f32 1.0, %v1738_v59 }
 0x429   : > { %v1079_v1 = vsel %vm1078_vm2, %v1736_v48, %v1075_v60  ;;  %v1087_v2 = vmul.f32 %v1740_v62, %v944_v50  ;;  %1741 = vpow2.f32 %v1578_v61  ;;  %vm1092_vm4 = vweird.f32 %v1740_v62 }
 0x42a   : > { %v1084_v3 = vsel %vm1081_vm3, %v1083_v63, %v1079_v1  ;;  %1743 = vrcp.f32 %v945_v0  ;;  %vm1093_vm6 = vmor %vm1091_vm5, %vm1092_vm4  ;;  %v1112_v19 = vand.u32 2147483648, %v945_v0  ;;  %v1110_v21 = vand.u32 2147483647, %v945_v0 }
 0x42b   : > { %1199 = vst [vmem:[%s2331_s26 + $0x40] sm:$0xff] %v1084_v3  ;;  %v1088_v4 = vsub.f32 1.0, %v1087_v2  ;;  %vm1106_vm9 = vweird.f32 %v945_v0 }
 0x42c   : > { %v1113_v27 = vor.u32 1.1754944e-38, %v1112_v19  ;;  %vm1111_vm11 = vcmp.eq.f32.partialorder %v1110_v21, 8.507059e+37 }
 0x42d   : > { %v1089_v6 = vmul.f32 %v1740_v62, %v1088_v4 }
 0x42e   : > { %v877_v8 = vpop.f32.mrf.mxu3 }
 0x42f   : > { %v1742_v9 = vpop.eup %1741  ;;  %v1090_v10 = vadd.f32 %v1740_v62, %v1089_v6  ;;  %v1579_v11 = vmul.f32 -1.442695, %v877_v8 }
 0x430   : > { %v1744_v12 = vpop.eup %1743  ;;  %v946_v14 = vadd.f32 1.0, %v1742_v9 }
 0x431   : > { %v1094_v15 = vsel %vm1093_vm6, %v1740_v62, %v1090_v10  ;;  %v1102_v16 = vmul.f32 %v1744_v12, %v945_v0  ;;  %1745 = vpow2.f32 %v1579_v11  ;;  %vm1107_vm8 = vweird.f32 %v1744_v12 }
 0x432   : > { %v1099_v17 = vsel %vm1096_vm7, %v1098_v13, %v1094_v15  ;;  %1747 = vrcp.f32 %v946_v14  ;;  %vm1108_vm10 = vmor %vm1106_vm9, %vm1107_vm8  ;;  %v1127_v33 = vand.u32 2147483648, %v946_v14  ;;  %v1125_v35 = vand.u32 2147483647, %v946_v14 }
 0x433   : > { %1200 = vst [vmem:[%s2331_s26 + $0x48] sm:$0xff] %v1099_v17  ;;  %v1103_v18 = vsub.f32 1.0, %v1102_v16  ;;  %vm1121_vm13 = vweird.f32 %v946_v14 }
 0x434   : > { %v1128_v41 = vor.u32 1.1754944e-38, %v1127_v33  ;;  %vm1126_vm15 = vcmp.eq.f32.partialorder %v1125_v35, 8.507059e+37 }
 0x435   : > { %v1104_v20 = vmul.f32 %v1744_v12, %v1103_v18 }
 0x436   : > { %v879_v22 = vpop.f32.mrf.mxu3 }
 0x437   : > { %v1746_v23 = vpop.eup %1745  ;;  %v1105_v24 = vadd.f32 %v1744_v12, %v1104_v20  ;;  %v1580_v25 = vmul.f32 -1.442695, %v879_v22 }
 0x438   : > { %v1748_v26 = vpop.eup %1747  ;;  %v947_v28 = vadd.f32 1.0, %v1746_v23 }
 0x439   : > { %v1109_v29 = vsel %vm1108_vm10, %v1744_v12, %v1105_v24  ;;  %v1117_v30 = vmul.f32 %v1748_v26, %v946_v14  ;;  %1749 = vpow2.f32 %v1580_v25  ;;  %vm1122_vm12 = vweird.f32 %v1748_v26 }
 0x43a   : > { %v1114_v31 = vsel %vm1111_vm11, %v1113_v27, %v1109_v29  ;;  %1751 = vrcp.f32 %v947_v28  ;;  %vm1123_vm14 = vmor %vm1121_vm13, %vm1122_vm12  ;;  %v1142_v47 = vand.u32 2147483648, %v947_v28  ;;  %v1140_v49 = vand.u32 2147483647, %v947_v28 }
 0x43b   : > { %1201 = vst [vmem:[%s2331_s26 + $0x50] sm:$0xff] %v1114_v31  ;;  %v1118_v32 = vsub.f32 1.0, %v1117_v30  ;;  %vm1136_vm1 = vweird.f32 %v947_v28 }
 0x43c   : > { %v1143_v55 = vor.u32 1.1754944e-38, %v1142_v47  ;;  %vm1141_vm3 = vcmp.eq.f32.partialorder %v1140_v49, 8.507059e+37 }
 0x43d   : > { %v1119_v34 = vmul.f32 %v1748_v26, %v1118_v32 }
 0x43e   : > { %v882_v36 = vpop.f32.mrf.mxu3 }
 0x43f   : > { %v1750_v37 = vpop.eup %1749  ;;  %v1120_v38 = vadd.f32 %v1748_v26, %v1119_v34  ;;  %v1581_v39 = vmul.f32 -1.442695, %v882_v36 }
 0x440   : > { %v1752_v40 = vpop.eup %1751  ;;  %v948_v42 = vadd.f32 1.0, %v1750_v37 }
 0x441   : > { %v1124_v43 = vsel %vm1123_vm14, %v1748_v26, %v1120_v38  ;;  %v1132_v44 = vmul.f32 %v1752_v40, %v947_v28  ;;  %1753 = vpow2.f32 %v1581_v39  ;;  %vm1137_vm0 = vweird.f32 %v1752_v40 }
 0x442   : > { %v1129_v45 = vsel %vm1126_vm15, %v1128_v41, %v1124_v43  ;;  %1755 = vrcp.f32 %v948_v42  ;;  %vm1138_vm2 = vmor %vm1136_vm1, %vm1137_vm0  ;;  %v1157_v61 = vand.u32 2147483648, %v948_v42  ;;  %v1155_v63 = vand.u32 2147483647, %v948_v42 }
 0x443   : > { %1202 = vst [vmem:[%s2331_s26 + $0x58] sm:$0xff] %v1129_v45  ;;  %v1133_v46 = vsub.f32 1.0, %v1132_v44  ;;  %vm1151_vm5 = vweird.f32 %v948_v42 }
 0x444   : > { %v1158_v3 = vor.u32 1.1754944e-38, %v1157_v61  ;;  %vm1156_vm7 = vcmp.eq.f32.partialorder %v1155_v63, 8.507059e+37 }
 0x445   : > { %v1134_v48 = vmul.f32 %v1752_v40, %v1133_v46 }
 0x446   : > { %v884_v50 = vpop.f32.mrf.mxu3 }
 0x447   : > { %v1754_v51 = vpop.eup %1753  ;;  %v1135_v52 = vadd.f32 %v1752_v40, %v1134_v48  ;;  %v1582_v53 = vmul.f32 -1.442695, %v884_v50 }
 0x448   : > { %v1756_v54 = vpop.eup %1755  ;;  %v949_v56 = vadd.f32 1.0, %v1754_v51 }
 0x449   : > { %v1139_v57 = vsel %vm1138_vm2, %v1752_v40, %v1135_v52  ;;  %v1147_v58 = vmul.f32 %v1756_v54, %v948_v42  ;;  %1757 = vpow2.f32 %v1582_v53  ;;  %vm1152_vm4 = vweird.f32 %v1756_v54 }
 0x44a   : > { %v1144_v59 = vsel %vm1141_vm3, %v1143_v55, %v1139_v57  ;;  %1759 = vrcp.f32 %v949_v56  ;;  %vm1153_vm6 = vmor %vm1151_vm5, %vm1152_vm4  ;;  %v1172_v9 = vand.u32 2147483648, %v949_v56  ;;  %v1170_v11 = vand.u32 2147483647, %v949_v56 }
 0x44b   : > { %1203 = vst [vmem:[%s2331_s26 + $0x60] sm:$0xff] %v1144_v59  ;;  %v1148_v60 = vsub.f32 1.0, %v1147_v58  ;;  %vm1166_vm9 = vweird.f32 %v949_v56 }
 0x44c   : > { %v1173_v14 = vor.u32 1.1754944e-38, %v1172_v9  ;;  %vm1171_vm11 = vcmp.eq.f32.partialorder %v1170_v11, 8.507059e+37 }
 0x44d   : > { %v1149_v62 = vmul.f32 %v1756_v54, %v1148_v60 }
 0x44f   : > { %v1758_v0 = vpop.eup %1757  ;;  %v1150_v1 = vadd.f32 %v1756_v54, %v1149_v62 }
 0x450   : > { %v1760_v2 = vpop.eup %1759  ;;  %v950_v4 = vadd.f32 1.0, %v1758_v0 }
 0x451   : > { %v1154_v5 = vsel %vm1153_vm6, %v1756_v54, %v1150_v1  ;;  %v1162_v6 = vmul.f32 %v1760_v2, %v949_v56  ;;  %vm1167_vm8 = vweird.f32 %v1760_v2 }
 0x452   : > { %v1159_v7 = vsel %vm1156_vm7, %v1158_v3, %v1154_v5  ;;  %1761 = vrcp.f32 %v950_v4  ;;  %vm1168_vm10 = vmor %vm1166_vm9, %vm1167_vm8  ;;  %v1187_v19 = vand.u32 2147483648, %v950_v4  ;;  %v1185_v21 = vand.u32 2147483647, %v950_v4 }
 0x453   : > { %1204 = vst [vmem:[%s2331_s26 + $0x68] sm:$0xff] %v1159_v7  ;;  %v1163_v8 = vsub.f32 1.0, %v1162_v6  ;;  %vm1181_vm13 = vweird.f32 %v950_v4 }
 0x454   : > { %v1188_v23 = vor.u32 1.1754944e-38, %v1187_v19  ;;  %vm1186_vm15 = vcmp.eq.f32.partialorder %v1185_v21, 8.507059e+37 }
 0x455   : > { %v1164_v10 = vmul.f32 %v1760_v2, %v1163_v8 }
 0x457   : > { %v1165_v12 = vadd.f32 %v1760_v2, %v1164_v10 }
 0x458   : > { %v1762_v13 = vpop.eup %1761 }
 0x459   : > { %v1169_v15 = vsel %vm1168_vm10, %v1760_v2, %v1165_v12  ;;  %v1177_v16 = vmul.f32 %v1762_v13, %v950_v4  ;;  %vm1182_vm12 = vweird.f32 %v1762_v13 }
 0x45a   : > { %v1174_v17 = vsel %vm1171_vm11, %v1173_v14, %v1169_v15  ;;  %vm1183_vm14 = vmor %vm1181_vm13, %vm1182_vm12 }
 0x45b   : > { %1205 = vst [vmem:[%s2331_s26 + $0x70] sm:$0xff] %v1174_v17  ;;  %v1178_v18 = vsub.f32 1.0, %v1177_v16 }
 0x45d   : > { %v1179_v20 = vmul.f32 %v1762_v13, %v1178_v18 }
 0x45f   : > { %v1180_v22 = vadd.f32 %v1762_v13, %v1179_v20 }
 0x461   : > { %v1184_v24 = vsel %vm1183_vm14, %v1762_v13, %v1180_v22 }
 0x462   : > { %v1189_v25 = vsel %vm1186_vm15, %v1188_v23, %v1184_v24 }
 0x463   : > { %1206 = vst [vmem:[%s2331_s26 + $0x78] sm:$0xff] %v1189_v25 }
 0x464   : > { %1938 = shalt.err (!%p1935_p2)
}
 0x465   : > { %1637 = dma.vmem_to_hbm [thread:$0]  (%p2071_p11), %s1226_s15, 2048, %s1228_s24, %s1208_s22, %s1993_s9, %s1993_s9, %s1994_s11  }
 0x466 PF: > { %s1259_s20 = sand.u32 1, %s1977_s18   ;;  %p1655_p3 = pnand %p1419_p9, %p2075_p12 }
 0x467   : > { %s1260_s7 = scalar_lea.sflag [#allocation4], %s1259_s20 }
 0x468   : > { %p1656_p4 = pneg %p1655_p3 }
 0x46a   : > { %1968 = dma.done.wait (%p1656_p4), %s1260_s7, 2048  }
 0x46b   : > { %1970 = vsyncadd (%p1656_p4), %s1260_s7, 4294965248  ;;  %s1270_s8 = scalar_lea.sflag [#allocation12], %s1259_s20 }
 0x46c   : > { %1972 = dma.done.wait (%p1656_p4), %s1270_s8, 2048  }
 0x46d   : > { %1974 = vsyncadd (%p1656_p4), %s1270_s8, 4294965248  ;;  %s2425_s21 = sld [smem:[#allocation20_spill]]  ;;  %s2428_s18 = smov %s1981_s19 }
 0x46e   : > { %s2426_s29 = sld [smem:[#allocation18_spill]] }
 0x46f   : > { %s2427_s20 = sld [smem:[#allocation21_spill]] }
 0x473   : > { %p28_p11 = scmp.ge.s32.totalorder %s2425_s21, 4  }
 0x474   : > { %s2429_s19 = smov %s2426_s29 }
 0x475   :  { %30 = sbr.rel (!%p28_p11) target bundleno = 14 (0xe), region = 135 }
 0x47a   :  { %1276 = vsyncpa [#allocation3], 1 }
 0x47b   :  { %1278 = vsyncpa [#allocation3 + $0x1], 1 }
 0x47c   :  { %1279 = vsyncpa [#allocation6], 1 }
 0x47d   :  { %1281 = vsyncpa [#allocation6 + $0x1], 1 }
 0x47e   :  { %1282 = vsyncpa [#allocation9], 1 }
 0x47f   :  { %1284 = vsyncpa [#allocation9 + $0x1], 1 }
 0x480   :  { %1285 = vsyncpa [#allocation4], 1 }
 0x481   :  { %1287 = vsyncpa [#allocation4 + $0x1], 1 }
 0x482   :  { %1288 = vsyncpa [#allocation12], 1 }
 0x483   :  { %1290 = vsyncpa [#allocation12 + $0x1], 1 }

</bundles_post_ra>
